<compile_context>
chip_gen: v5e
topology: v5e:2x2
jax: 0.10.0
libtpu: 0.0.40
codegen_flags: <defaults>
</compile_context>

<pallas_src>
import functools

import jax
import jax.numpy as jnp
from jax.experimental import pallas as pl
from jax.experimental.pallas import tpu as pltpu


def _round_up(x, m):
    return ((x + m - 1) // m) * m


def _patch_emb_kernel(tok_ref, w_ref, add_ref, o_ref):
    # tok_ref: (BB, TT, K_pad)  bf16 patch vectors (zero rows for cls / padding)
    # w_ref:   (K_pad, E_pad)   bf16 conv weight, reshaped+transposed+zero-padded (invariant)
    # add_ref: (TT, E_pad)      f32  pre-folded bias / pos / cls additive table
    # o_ref:   (BB, TT, E_pad)  output block
    bb, tt, kp = tok_ref.shape
    ep = o_ref.shape[-1]
    tok = tok_ref[...].reshape(bb * tt, kp)              # leading-dim collapse (free)
    emb = jnp.dot(tok, w_ref[...],
                  preferred_element_type=jnp.float32)    # MXU: bf16 in, f32 accumulate
    emb = emb.reshape(bb, tt, ep) + add_ref[...]         # broadcast add over batch dim
    o_ref[...] = emb.astype(o_ref.dtype)                 # single aligned lane-dense store


@functools.partial(jax.jit, static_argnames=("patch_size", "out_dtype"))
def patch_emb_forward(x, conv_w, conv_b, cls, pos_embd, *, patch_size, out_dtype=None):
    """x: (B, C, H, W) NCHW float32. Returns (B, num_patches + 1, emb_dim)."""
    B, C, H, W = x.shape
    P = patch_size
    if H % P or W % P:
        raise ValueError("H and W must be multiples of patch_size")
    Hp, Wp = H // P, W // P
    N = Hp * Wp
    E = conv_w.shape[0]
    K = C * P * P
    T = N + 1                                    # tokens incl. cls (cls appended LAST)
    out_dt = jnp.dtype(out_dtype) if out_dtype is not None else jnp.dtype(x.dtype)

    # ---- static tiling / per-generation VMEM budgeting (trace-time Python) --------
    K_pad = _round_up(K, 128)                    # lane-dense matmul K
    E_pad = _round_up(E, 128)                    # lane-dense output (unmasked vst)

    try:                                         # v5e/v6e: 128 MiB, v7x: 64 MiB
        phys_vmem = int(pltpu.get_tpu_info().vmem_capacity_bytes)
    except Exception:
        phys_vmem = 64 * 1024 * 1024             # conservative fallback (v7x)
    vmem_limit = min(phys_vmem * 3 // 4, 100 * 1024 * 1024)

    ob = int(jnp.dtype(out_dt).itemsize)
    TT1 = _round_up(T, 8)
    # Per-batch-element bytes per step: 2x tok (bf16) + 2x out + f32 dot/add temps.
    per_b = TT1 * (4 * K_pad + 2 * E_pad * ob + 8 * E_pad)
    # Grid-invariant w + add (still double-buffered by the default pipeline).
    invariant = 2 * K_pad * E_pad * 2 + 2 * TT1 * E_pad * 4
    BB = int(max(1, min(B, 24, (vmem_limit - invariant) // max(per_b, 1))))
    n_b_blocks = pl.cdiv(B, BB)                  # pad B up; no divisor requirement
    B_pad = BB * n_b_blocks

    # Token split only on multi-TensorCore chips, and only when the batch grid alone
    # cannot give both cores a step. Single-TC chips (v5e / v6e) keep the token dim whole.
    kind = jax.devices()[0].device_kind.lower()
    single_tc = any(s in kind
                    for s in ("v5e", "v5 lite", "v5lite", "v6e", "v6 lite", "v6lite"))
    n_t_tiles = 2 if (n_b_blocks < 2 and not single_tc and T > 8) else 1
    TT = _round_up(pl.cdiv(T, n_t_tiles), 8)
    T_pad = TT * n_t_tiles

    # ---- glue (XLA, intended to fuse): bf16 cast -> unfold -> pad ------------------
    # k index order is (c, ph, pw), matching PyTorch's Conv2d weight flatten order.
    xb = x.astype(jnp.bfloat16)                  # cast BEFORE the layout-changing copy
    patches = (xb.reshape(B, C, Hp, P, Wp, P)
                 .transpose(0, 2, 4, 1, 3, 5)    # (B, Hp, Wp, C, P, P)
                 .reshape(B, N, K))
    tokens = jnp.pad(patches,
                     ((0, B_pad - B), (0, T_pad - N), (0, K_pad - K)))  # (B_pad,T_pad,K_pad)

    w_t = jnp.pad(conv_w.reshape(E, K).T.astype(jnp.bfloat16),
                  ((0, K_pad - K), (0, E_pad - E)))                     # (K_pad, E_pad)

    pos2d = pos_embd.reshape(T, E).astype(jnp.float32)
    add_rows = jnp.concatenate(
        [pos2d[:N] + conv_b.reshape(1, E).astype(jnp.float32),   # patch rows: pos + bias
         pos2d[N:] + cls.reshape(1, E).astype(jnp.float32)],     # cls row (idx N): pos + cls
        axis=0)                                                  # (T, E)
    add = jnp.pad(add_rows, ((0, T_pad - T), (0, E_pad - E)))    # (T_pad, E_pad)

    out_padded = pl.pallas_call(
        _patch_emb_kernel,
        out_shape=jax.ShapeDtypeStruct((B_pad, T_pad, E_pad), out_dt),
        grid_spec=pltpu.PrefetchScalarGridSpec(
            num_scalar_prefetch=0,
            # token tile OUTER: `add` fetched n_t_tiles times total, clean 2-way TC split.
            grid=(n_t_tiles, n_b_blocks),
            in_specs=[
                pl.BlockSpec((BB, TT, K_pad), lambda j, i: (i, j, 0)),
                pl.BlockSpec((K_pad, E_pad), lambda j, i: (0, 0)),   # grid-invariant
                pl.BlockSpec((TT, E_pad), lambda j, i: (j, 0)),      # invariant per token tile
            ],
            out_specs=pl.BlockSpec((BB, TT, E_pad), lambda j, i: (i, j, 0)),
        ),
        compiler_params=pltpu.CompilerParams(
            dimension_semantics=("parallel", "parallel"),
            vmem_limit_bytes=int(vmem_limit)),
    )(tokens, w_t, add)

    # Slice off alignment padding (batch rows >= B, token rows >= T, lanes >= E).
    # For real ViT widths (E a multiple of 128) only the small token/batch padding remains;
    # consumers that tolerate padded T should take out_padded directly so XLA fuses the
    # slice into the next op instead of materializing another copy.
    return out_padded[:B, :T, :E]


def _reference(x, conv_w, conv_b, cls, pos_embd, patch_size):
    """Pure-JAX f32 reference mirroring the PyTorch forward (for validation)."""
    y = jax.lax.conv_general_dilated(
        x, conv_w, window_strides=(patch_size, patch_size), padding="VALID",
        dimension_numbers=("NCHW", "OIHW", "NCHW"))
    y = y + conv_b.reshape(1, -1, 1, 1)
    B_, E, Hp, Wp = y.shape
    y = y.reshape(B_, E, Hp * Wp).transpose(0, 2, 1)             # (B, N, E)
    cls_b = jnp.broadcast_to(cls.reshape(1, 1, E), (B_, 1, E))
    y = jnp.concatenate([y, cls_b], axis=1)                      # cls token last
    return y + pos_embd.reshape(1, Hp * Wp + 1, E)


if __name__ == "__main__":
    # Small, self-consistent configuration (synthetic Model_Args):
    #   img_size=16, patch_size=4, n_channels=3, emb_dim=16 -> num_patches=16
    B, C, IMG, P, E = 2, 3, 16, 4, 16
    N = (IMG // P) ** 2

    key = jax.random.PRNGKey(0)
    kx, kw, kb, kc, kp = jax.random.split(key, 5)
    x = jax.random.normal(kx, (B, C, IMG, IMG), dtype=jnp.float32)
    conv_w = jax.random.normal(kw, (E, C, P, P), dtype=jnp.float32) * 0.05
    conv_b = jax.random.normal(kb, (E,), dtype=jnp.float32) * 0.05
    cls = jax.random.normal(kc, (1, 1, E), dtype=jnp.float32)
    pos_embd = jax.random.normal(kp, (1, N + 1, E), dtype=jnp.float32)

    out = patch_emb_forward(x, conv_w, conv_b, cls, pos_embd, patch_size=P)
    out = jax.block_until_ready(out)

    ref = _reference(x, conv_w, conv_b, cls, pos_embd, P)
    assert out.shape == (B, N + 1, E), out.shape
    # bf16 matmul operands -> small drift vs the exact-f32 conv reference.
    err = float(jnp.max(jnp.abs(out - ref)))
    assert jnp.allclose(out, ref, atol=5e-2, rtol=5e-2), f"mismatch vs reference, max err {err}"

    print("KERNEL_OK")
</pallas_src>

<mosaic_0001>
module attributes {stable_mosaic.version = 11 : i64} {
  func.func @_patch_emb_kernel(%arg0: i32, %arg1: i32, %arg2: memref<2x16x128xbf16, #tpu.memory_space<vmem>>, %arg3: memref<128x128xbf16, #tpu.memory_space<vmem>>, %arg4: memref<16x128xf32, #tpu.memory_space<vmem>>, %arg5: memref<2x16x128xf32, #tpu.memory_space<vmem>>) attributes {dimension_semantics = [#tpu.dimension_semantics<parallel>, #tpu.dimension_semantics<parallel>], iteration_bounds = array<i64: 2, 1>, scalar_prefetch = 0 : i64, scratch_operands = 0 : i64, tpu.core_type = #tpu.core_type<tc>, window_params = [{transform_indices = @transform_0, window_bounds = array<i64: 2, 16, 128>}, {pipeline_mode = #tpu.pipeline_mode<synchronous>, transform_indices = @transform_1, window_bounds = array<i64: 128, 128>}, {transform_indices = @transform_2, window_bounds = array<i64: 16, 128>}, {transform_indices = @transform_3, window_bounds = array<i64: 2, 16, 128>}]} {
    %c0 = arith.constant 0 : index
    %c0_0 = arith.constant 0 : index
    %c0_1 = arith.constant 0 : index
    %0 = vector.load %arg2[%c0, %c0_0, %c0_1] : memref<2x16x128xbf16, #tpu.memory_space<vmem>>, vector<2x16x128xbf16>
    %1 = vector.shape_cast %0 : vector<2x16x128xbf16> to vector<32x128xbf16>
    %c0_2 = arith.constant 0 : index
    %c0_3 = arith.constant 0 : index
    %2 = vector.load %arg3[%c0_2, %c0_3] : memref<128x128xbf16, #tpu.memory_space<vmem>>, vector<128x128xbf16>
    %cst = arith.constant dense<0.000000e+00> : vector<32x128xf32>
    %3 = tpu.matmul %1, %2, %cst {dimension_numbers = #tpu.dot_dimension_numbers<[1], [0], [0], [1], [0, 0, 1, 1], [], []>} : vector<32x128xbf16>, vector<128x128xbf16>, vector<32x128xf32> -> vector<32x128xf32>
    %4 = vector.shape_cast %3 : vector<32x128xf32> to vector<2x16x128xf32>
    %c0_4 = arith.constant 0 : index
    %c0_5 = arith.constant 0 : index
    %5 = vector.load %arg4[%c0_4, %c0_5] : memref<16x128xf32, #tpu.memory_space<vmem>>, vector<16x128xf32>
    %6 = vector.shape_cast %5 : vector<16x128xf32> to vector<1x16x128xf32>
    %7 = vector.broadcast %6 : vector<1x16x128xf32> to vector<2x16x128xf32>
    %8 = arith.addf %4, %7 : vector<2x16x128xf32>
    %c0_6 = arith.constant 0 : index
    %c0_7 = arith.constant 0 : index
    %c0_8 = arith.constant 0 : index
    %9 = vector.load %arg5[%c0_6, %c0_7, %c0_8] : memref<2x16x128xf32, #tpu.memory_space<vmem>>, vector<2x16x128xf32>
    tpu.vector_store %arg5[%c0_6, %c0_7, %c0_8], %8 {strides = array<i32>} : memref<2x16x128xf32, #tpu.memory_space<vmem>>, vector<2x16x128xf32>,
    return
  }
  func.func @transform_0(%arg0: i32, %arg1: i32) -> (i32, i32, i32) {
    %c0_i32 = arith.constant 0 : i32
    %c0_i32_0 = arith.constant 0 : i32
    return %arg1, %arg0, %c0_i32 : i32, i32, i32
  }
  func.func @transform_1(%arg0: i32, %arg1: i32) -> (i32, i32) {
    %c0_i32 = arith.constant 0 : i32
    %c0_i32_0 = arith.constant 0 : i32
    %c0_i32_1 = arith.constant 0 : i32
    return %c0_i32, %c0_i32_0 : i32, i32
  }
  func.func @transform_2(%arg0: i32, %arg1: i32) -> (i32, i32) {
    %c0_i32 = arith.constant 0 : i32
    %c0_i32_0 = arith.constant 0 : i32
    return %arg0, %c0_i32 : i32, i32
  }
  func.func @transform_3(%arg0: i32, %arg1: i32) -> (i32, i32, i32) {
    %c0_i32 = arith.constant 0 : i32
    %c0_i32_0 = arith.constant 0 : i32
    return %arg1, %arg0, %c0_i32 : i32, i32, i32
  }
}

</mosaic_0001>

<bundles_post_ra>
// kernel: patch_emb_forward.1
= control target key start
LH: loop header
LB: loop body
LE: loop exit
PB: predicated region body
PF: predicated region fallthrough
CT: control target
= control target key end

     0   :  { %s693_s12 = smov 0   ;;  %s695_s13 = smov 0   ;;  %s793_s0 = inlined_call_operand.vmem [shape: bf16[2,32,128], index: 0, kind: input, shape index: {}]   ;;  %s794_s1 = inlined_call_operand.vmem [shape: bf16[128,128], index: 1, kind: input, shape index: {}]   ;;  %s795_s2 = inlined_call_operand.vmem [shape: f32[32,128], index: 2, kind: input, shape index: {}]   ;;  %s796_s3 = inlined_call_operand.vmem [shape: f32[2,32,128], index: 3, kind: output, shape index: {}]  }
   0x1   :  { %s697_s14 = smov 0   ;;  %s699_s15 = smov 0  }
   0x2   :  { %s701_s16 = smov 0  }
   0x3 LB: > { %s25_s17 = sadd.s32 1, %s667_s15  ;;  %s516_s18 = sadd.s32 4294967295, %s671_s16   ;;  %s671_s16 = sphi %s701_s16, %s13_s16   ;;  %s667_s15 = sphi %s699_s15, %s801_s15   ;;  %s663_s14 = sphi %s697_s14, %s800_s14   ;;  %s659_s13 = sphi %s695_s13, %s799_s13   ;;  %s655_s12 = sphi %s693_s12, %s798_s12  }
   0x4   : > { %p27_p0 = scmp.ge.s32.totalorder %s25_s17, 2  ;;  %p41_p1 = scmp.ne.s32.totalorder %s659_s13, %s655_s12 }
   0x5   : > { %p42_p2 = scmp.eq.s32.totalorder %s671_s16, 0  ;;  %p120_p4 = scmp.eq.s32.totalorder %s516_s18, 1 }
   0x6   : > { %s803_s17 = smov (%p27_p0, %s25_s17), 0  ;;  %s34_s20 = sadd.s32 1, %s659_s13 }
   0x7   : > { %p43_p3 = por %p42_p2, %p41_p1  ;;  %s30_s19 = ssub.s32 %s667_s15, %s803_s17 }
   0x8   : > { %p32_p5 = scmp.eq.s32.totalorder %s30_s19, 0  ;;  %p728_p6 = por %p120_p4, %p41_p1 }
   0x9   : > { %p519_p7 = scmp.ge.s32.totalorder %s671_s16, 2 }
   0xa   : > { %s733_s22 = scalar_select %p32_p5, %s659_s13, %s34_s20  }
   0xb   : > { %145 = sbr.rel (%p519_p7) target bundleno = 22 (0x16), region = 20 }
  0x10   : > { %148 = sbr.rel (!%p43_p3) target bundleno = 22 (0x16), region = 24  ;;  %s150_s23 = sand.u32 (%p43_p3), 1, %s659_s13  }
  0x11   : > { %s573_s24 = sshll.u32 (%p43_p3), %s667_s15, 3  ;;  %s520_s25 = sshll.u32 (%p43_p3), %s150_s23, 4 }
  0x12   : > { %s158_s28 = scalar_lea.vmem (%p43_p3), %s793_s0, %s573_s24  ;;  %s152_s29 = scalar_lea.vmem (%p43_p3), [#allocation2], %s520_s25 }
  0x13   : > { %v175_v0 = vld [vmem:[%s158_s28] sm:$0xff] (%p43_p3)   ;;  %v179_v1 = vld [vmem:[%s158_s28 + $0x10] sm:$0xff] (%p43_p3)  }
  0x14   : > { %176 = vst [vmem:[%s152_s29] sm:$0xff] (%p43_p3), %v175_v0  }
  0x15   : > { %180 = vst [vmem:[%s152_s29 + $0x8] sm:$0xff] %v179_v1  }
  0x16 PF: > { %p523_p8 = scmp.ge.s32.totalorder %s671_s16, 1  ;;  %p222_p9 = scmp.lt.s32.totalorder %s671_s16, 3 }
  0x18   : > { %p223_p10 = pnand %p523_p8, %p222_p9 }
  0x19   : > { %s229_s23 = sand.u32 (!%p223_p10), 1, %s655_s12   ;;  %s526_s12 = sshll.u32 (!%p223_p10), %s663_s14, 1 }
  0x1a   : > { %226 = sbr.rel (%p223_p10) target bundleno = 209 (0xd1), region = 69  ;;  %s524_s26 = sshll.u32 (!%p223_p10), %s229_s23, 4 }
  0x1b   : > { %s231_s29 = scalar_lea.vmem (!%p223_p10), [#allocation2], %s524_s26  ;;  %p259_p11 = scmp.lt.s32.totalorder (!%p223_p10), %s526_s12, 3 }
  0x1c   : > { %s525_s7 = sshll.u32 (!%p223_p10), %s229_s23, 5 }
  0x1d   : > { %s255_s8 = scalar_lea.vmem (!%p223_p10), [#allocation3], %s525_s7 }
  0x1f   : > { %v583_v2 = vld [vmem:[%s794_s1 + $0x38] sm:$0xff]  ;;  %v582_v3 = vld [vmem:[%s794_s1 + $0x30] sm:$0xff]  ;;  %v581_v4 = vld [vmem:[%s794_s1 + $0x28] sm:$0xff]  ;;  %s805_s12 = smov (!%p259_p11, %s526_s12), 3  ;;  %s584_s9 = sshll.u32 (%p728_p6), %s663_s14, 4 }
  0x20   : > { %346 = vmatpush.bf16.msra.mxu0 %v583_v2  ;;  %585 = vmatpush.bf16.msra.mxu1 %v583_v2  ;;  %v580_v5 = vld [vmem:[%s794_s1 + $0x20] sm:$0xff]  ;;  %v579_v6 = vld [vmem:[%s794_s1 + $0x18] sm:$0xff]  ;;  %v578_v7 = vld [vmem:[%s794_s1 + $0x10] sm:$0xff]  ;;  %s527_s30 = sshll.u32 %s805_s12, 3  ;;  %s387_s18 = scalar_lea.vmem (%p728_p6), %s796_s3, %s584_s9 }
  0x21   : > { %v577_v8 = vld [vmem:[%s794_s1 + $0x8] sm:$0xff]  ;;  %v576_v9 = vld [vmem:[%s794_s1] sm:$0xff]  ;;  %s262_s6 = scalar_lea.vmem %s795_s2, %s527_s30 }
  0x22   : > { %v574_v10 = vld [vmem:[%s231_s29] sm:$0xff]  ;;  %v575_v11 = vld [vmem:[%s231_s29 + $0x8] sm:$0xff] }
  0x23   : > { %v365_v12 = vld [vmem:[%s262_s6] sm:$0xff]  ;;  %v366_v17 = vld [vmem:[%s262_s6 + $0x8] sm:$0xff] }
  0x24   : > { %347 = vmatpush.bf16.msra.mxu0 %v582_v3  ;;  %586 = vmatpush.bf16.msra.mxu1 %v582_v3 }
  0x28   : > { %348 = vmatpush.bf16.msra.mxu0 %v581_v4  ;;  %587 = vmatpush.bf16.msra.mxu1 %v581_v4 }
  0x2c   : > { %349 = vmatpush.bf16.msra.mxu0 %v580_v5  ;;  %588 = vmatpush.bf16.msra.mxu1 %v580_v5 }
  0x30   : > { %350 = vmatpush.bf16.msra.mxu0 %v579_v6  ;;  %589 = vmatpush.bf16.msra.mxu1 %v579_v6 }
  0x34   : > { %351 = vmatpush.bf16.msra.mxu0 %v578_v7  ;;  %590 = vmatpush.bf16.msra.mxu1 %v578_v7 }
  0x38   : > { %352 = vmatpush.bf16.msra.mxu0 %v577_v8  ;;  %591 = vmatpush.bf16.msra.mxu1 %v577_v8 }
  0x3c   : > { %353 = vmatpush.bf16.msra.mxu0 %v576_v9  ;;  %592 = vmatpush.bf16.msra.mxu1 %v576_v9 }
  0x3f   : > { %354 = vmatmul.bf16.vlgmr.msra.gmra.mxu0 %v574_v10  ;;  %359 = vmatmul.bf16.vlgmr.msra.gmra.mxu1 %v575_v11 }
  0xbc   : > { %v355_v13 = vpop.f32.mrf.mxu0  ;;  %v360_v14 = vpop.f32.mrf.mxu1 }
  0xbd   : > { %v367_v15 = vadd.f32 %v365_v12, %v355_v13  ;;  %v369_v16 = vadd.f32 %v365_v12, %v360_v14 }
  0xbf   : > { %371 = vst [vmem:[%s255_s8] sm:$0xff] %v367_v15 }
  0xc0   : > { %373 = vst [vmem:[%s255_s8 + $0x10] sm:$0xff] %v369_v16 }
  0xc4   : > { %v357_v18 = vpop.f32.mrf.mxu0  ;;  %v362_v19 = vpop.f32.mrf.mxu1  ;;  %381 = sbr.rel (!%p728_p6) target bundleno = 209 (0xd1), region = 77 }
  0xc5   : > { %v368_v20 = vadd.f32 %v366_v17, %v357_v18  ;;  %v370_v21 = vadd.f32 %v366_v17, %v362_v19 }
  0xc6   : > { %v422_v22 = vld [vmem:[%s255_s8] sm:$0xff] (%p728_p6) }
  0xc7   : > { %372 = vst [vmem:[%s255_s8 + $0x8] sm:$0xff] %v368_v20  ;;  %v426_v24 = vld [vmem:[%s255_s8 + $0x10] sm:$0xff] (%p728_p6) }
  0xc8   : > { %374 = vst [vmem:[%s255_s8 + $0x18] sm:$0xff] %v370_v21 }
  0xc9   : > { %423 = vst [vmem:[%s387_s18] sm:$0xff] %v422_v22 }
  0xca   : > { %427 = vst [vmem:[%s387_s18 + $0x20] sm:$0xff] %v426_v24 }
  0xce   : > { %v424_v23 = vld [vmem:[%s255_s8 + $0x8] sm:$0xff] }
  0xcf   : > { %v428_v25 = vld [vmem:[%s255_s8 + $0x18] sm:$0xff]  ;;  %425 = vst [vmem:[%s387_s18 + $0x8] sm:$0xff] %v424_v23 }
  0xd0   : > { %429 = vst [vmem:[%s387_s18 + $0x28] sm:$0xff] %v428_v25 }
  0xd1 PF: > { %s13_s16 = sadd.s32 1, %s671_s16   ;;  %s798_s12 = smov %s659_s13 }
  0xd2   : > { %p10_p12 = scmp.ge.s32.totalorder %s13_s16, 4   ;;  %s799_s13 = smov %s733_s22 }
  0xd3   : > { %s800_s14 = smov %s667_s15  ;;  %s801_s15 = smov %s803_s17 }
  0xd4   :  { %12 = sbr.rel (!%p10_p12) target bundleno = 3 (0x3), region = 149 }

</bundles_post_ra>
